<compile_context>
chip_gen: v5e
topology: v5e:2x2
jax: 0.10.0
libtpu: 0.0.40
codegen_flags: <defaults>
</compile_context>

<pallas_src>
import functools

import jax
import jax.numpy as jnp
from jax import lax
from jax.experimental import pallas as pl
from jax.experimental.pallas import tpu as pltpu


# Lanes per H*W tile. Sized so that for C <= 512 (f32) the double-buffered input
# tiles + accumulator + target gram stay comfortably inside v7x's 64 MiB VMEM
# (and under default scoped limits on v5e/v6e).
_DEFAULT_BLOCK_K = 2048
_VMEM_LIMIT_BYTES = 64 * 1024 * 1024


def _pick_block_k(hw, max_block_k):
    """Largest power-of-two multiple of 128 that divides `hw`, capped at max_block_k.

    Falls back to a single full-width block when hw is not 128-aligned (a block
    equal to the full array dim is always legal).
    """
    if hw % 128 != 0:
        return hw
    max_block_k = max(int(max_block_k), 128)
    tk = 128
    while tk * 2 <= max_block_k and hw % (tk * 2) == 0:
        tk *= 2
    return tk


# ---------------------------------------------------------------------------
# Kernels
# ---------------------------------------------------------------------------
def _gram_kernel(feat_ref, gram_ref, acc_ref, *, inv_norm):
    """Accumulate F_k @ F_k.T over H*W tiles; scale by inv_norm at finalize."""
    k = pl.program_id(0)

    @pl.when(k == 0)
    def _init():
        acc_ref[...] = jnp.zeros_like(acc_ref)

    f = feat_ref[...]  # (C, tk) in the input dtype (bf16 stays bf16)
    acc_ref[...] += lax.dot_general(
        f, f,
        dimension_numbers=(((1,), (1,)), ((), ())),  # F @ F.T without a transpose copy
        preferred_element_type=jnp.float32,
    )

    @pl.when(k == pl.num_programs(0) - 1)
    def _finalize():
        gram_ref[...] = (acc_ref[...] * inv_norm).astype(gram_ref.dtype)


def _style_loss_kernel(feat_ref, target_ref, loss_ref, acc_ref, *, inv_norm, inv_gsize):
    """Gram accumulation over H*W tiles + MSE against the target gram at finalize."""
    k = pl.program_id(0)

    @pl.when(k == 0)
    def _init():
        acc_ref[...] = jnp.zeros_like(acc_ref)

    f = feat_ref[...]  # (C, tk)
    acc_ref[...] += lax.dot_general(
        f, f,
        dimension_numbers=(((1,), (1,)), ((), ())),
        preferred_element_type=jnp.float32,
    )

    @pl.when(k == pl.num_programs(0) - 1)
    def _finalize():
        g = acc_ref[...] * inv_norm
        diff = g - target_ref[...].astype(jnp.float32)
        # mean over the C*C gram entries, written once to the SMEM scalar output
        loss_ref[0, 0] = jnp.sum(diff * diff) * inv_gsize


# ---------------------------------------------------------------------------
# Wrappers
# ---------------------------------------------------------------------------
def gram_matrix(img_fm, *, block_k=_DEFAULT_BLOCK_K):
    """Equivalent of torch gram_matrix: (a,b,c,d) -> (b,b) / (a*b*c*d)."""
    a, b, c, d = img_fm.shape
    if a != 1:
        # torch's features.view(b, c*d) only type-checks when a == 1
        raise ValueError(f"StyleLoss gram_matrix requires batch == 1, got a={a}")
    hw = c * d
    feats = img_fm.reshape(b, hw)
    tk = _pick_block_k(hw, block_k)
    inv_norm = 1.0 / float(a * b * c * d)

    return pl.pallas_call(
        functools.partial(_gram_kernel, inv_norm=inv_norm),
        out_shape=jax.ShapeDtypeStruct((b, b), jnp.float32),
        grid=(hw // tk,),
        in_specs=[pl.BlockSpec((b, tk), lambda k: (0, k))],
        out_specs=pl.BlockSpec((b, b), lambda k: (0, 0)),
        scratch_shapes=[pltpu.VMEM((b, b), jnp.float32)],
        compiler_params=pltpu.CompilerParams(
            dimension_semantics=("arbitrary",),
            vmem_limit_bytes=_VMEM_LIMIT_BYTES,
        ),
    )(feats)


def style_mse_loss(x, target_gram, *, block_k=_DEFAULT_BLOCK_K):
    """mse_loss(gram_matrix(x), target_gram), fused into one Pallas kernel."""
    a, b, c, d = x.shape
    if a != 1:
        raise ValueError(f"StyleLoss requires batch == 1, got a={a}")
    hw = c * d
    feats = x.reshape(b, hw)
    tk = _pick_block_k(hw, block_k)
    inv_norm = 1.0 / float(a * b * c * d)
    inv_gsize = 1.0 / float(b * b)

    loss = pl.pallas_call(
        functools.partial(_style_loss_kernel, inv_norm=inv_norm, inv_gsize=inv_gsize),
        out_shape=jax.ShapeDtypeStruct((1, 1), jnp.float32),
        grid=(hw // tk,),
        in_specs=[
            pl.BlockSpec((b, tk), lambda k: (0, k)),
            pl.BlockSpec((b, b), lambda k: (0, 0)),
        ],
        out_specs=pl.BlockSpec(
            (1, 1), lambda k: (0, 0), memory_space=pltpu.MemorySpace.SMEM
        ),
        scratch_shapes=[pltpu.VMEM((b, b), jnp.float32)],
        compiler_params=pltpu.CompilerParams(
            dimension_semantics=("arbitrary",),
            vmem_limit_bytes=_VMEM_LIMIT_BYTES,
        ),
    )(feats, target_gram.astype(jnp.float32))
    return loss[0, 0]


class StyleLoss:
    """JAX/Pallas equivalent of the PyTorch StyleLoss module."""

    def __init__(self, target_feature, *, block_k=_DEFAULT_BLOCK_K):
        self._block_k = block_k
        # target gram computed once at init ("detached" = just a constant array)
        self.target = gram_matrix(target_feature, block_k=block_k)
        self.loss = None

    def __call__(self, x):
        self.loss = style_mse_loss(x, self.target, block_k=self._block_k)
        return x  # forward returns the input unchanged


# ---------------------------------------------------------------------------
# Pure-JAX reference for sanity checks
# ---------------------------------------------------------------------------
def _gram_ref(x):
    a, b, c, d = x.shape
    f = x.reshape(b, c * d).astype(jnp.float32)
    return (f @ f.T) / float(a * b * c * d)


def _loss_ref(x, target_feature):
    return jnp.mean((_gram_ref(x) - _gram_ref(target_feature)) ** 2)


if __name__ == "__main__":
    key = jax.random.PRNGKey(0)
    k1, k2 = jax.random.split(key)

    # small shapes consistent with the module (torch's .view(b, c*d) requires a == 1)
    a, b, c, d = 1, 16, 16, 16  # C=16, H*W=256
    target_feature = jax.random.normal(k1, (a, b, c, d), dtype=jnp.float32)
    x = jax.random.normal(k2, (a, b, c, d), dtype=jnp.float32)

    # 1) default tiling (single K tile at this size)
    module = StyleLoss(target_feature)
    out = module(x)
    out = jax.block_until_ready(out)
    loss = jax.block_until_ready(module.loss)

    # 2) small block_k to exercise the multi-tile accumulation path (2 K tiles)
    module_tiled = StyleLoss(target_feature, block_k=128)
    out_tiled = module_tiled(x)
    out_tiled = jax.block_until_ready(out_tiled)
    loss_tiled = jax.block_until_ready(module_tiled.loss)

    # sanity checks against the pure-JAX reference
    gram_ref = _gram_ref(x)
    gram_ker = jax.block_until_ready(gram_matrix(x, block_k=128))
    loss_ref = _loss_ref(x, target_feature)

    assert out.shape == x.shape
    assert out_tiled.shape == x.shape
    assert jnp.allclose(gram_ker, gram_ref, rtol=1e-5, atol=1e-6), (gram_ker, gram_ref)
    assert jnp.allclose(loss, loss_ref, rtol=1e-4, atol=1e-7), (loss, loss_ref)
    assert jnp.allclose(loss_tiled, loss_ref, rtol=1e-4, atol=1e-7), (loss_tiled, loss_ref)

    print("KERNEL_OK")
</pallas_src>

<mosaic_0001>
module attributes {stable_mosaic.version = 11 : i64} {
  func.func @_gram_kernel(%arg0: i32, %arg1: memref<16x256xf32, #tpu.memory_space<vmem>>, %arg2: memref<16x16xf32, #tpu.memory_space<vmem>>, %arg3: memref<16x16xf32, #tpu.memory_space<vmem>>) attributes {dimension_semantics = [#tpu.dimension_semantics<arbitrary>], iteration_bounds = array<i64: 1>, scalar_prefetch = 0 : i64, scratch_operands = 1 : i64, tpu.core_type = #tpu.core_type<tc>, window_params = [{transform_indices = @transform_0, window_bounds = array<i64: 16, 256>}, {pipeline_mode = #tpu.pipeline_mode<synchronous>, transform_indices = @transform_1, window_bounds = array<i64: 16, 16>}]} {
    %c0_i32 = arith.constant 0 : i32
    %0 = arith.cmpi eq, %arg0, %c0_i32 : i32
    %1 = arith.extui %0 : i1 to i32
    %c0_i32_0 = arith.constant 0 : i32
    %2 = arith.cmpi ne, %1, %c0_i32_0 : i32
    scf.if %2 {
      %cst_8 = arith.constant 0.000000e+00 : f32
      %11 = vector.broadcast %cst_8 : f32 to vector<16x16xf32>
      %c0_9 = arith.constant 0 : index
      %c0_10 = arith.constant 0 : index
      %12 = vector.load %arg3[%c0_9, %c0_10] : memref<16x16xf32, #tpu.memory_space<vmem>>, vector<16x16xf32>
      tpu.vector_store %arg3[%c0_9, %c0_10], %11 {strides = array<i32>} : memref<16x16xf32, #tpu.memory_space<vmem>>, vector<16x16xf32>,
    } else {
    }
    %c0 = arith.constant 0 : index
    %c0_1 = arith.constant 0 : index
    %3 = vector.load %arg1[%c0, %c0_1] : memref<16x256xf32, #tpu.memory_space<vmem>>, vector<16x256xf32>
    %c0_2 = arith.constant 0 : index
    %c0_3 = arith.constant 0 : index
    %4 = vector.load %arg3[%c0_2, %c0_3] : memref<16x16xf32, #tpu.memory_space<vmem>>, vector<16x16xf32>
    %cst = arith.constant dense<0.000000e+00> : vector<16x16xf32>
    %5 = tpu.matmul %3, %3, %cst {dimension_numbers = #tpu.dot_dimension_numbers<[1], [1], [0], [0], [0, 0, 1, 0], [], []>} : vector<16x256xf32>, vector<16x256xf32>, vector<16x16xf32> -> vector<16x16xf32>
    %6 = arith.addf %4, %5 : vector<16x16xf32>
    %c0_4 = arith.constant 0 : index
    %c0_5 = arith.constant 0 : index
    %7 = vector.load %arg3[%c0_4, %c0_5] : memref<16x16xf32, #tpu.memory_space<vmem>>, vector<16x16xf32>
    tpu.vector_store %arg3[%c0_4, %c0_5], %6 {strides = array<i32>} : memref<16x16xf32, #tpu.memory_space<vmem>>, vector<16x16xf32>,
    %c0_i32_6 = arith.constant 0 : i32
    %8 = arith.cmpi eq, %arg0, %c0_i32_6 : i32
    %9 = arith.extui %8 : i1 to i32
    %c0_i32_7 = arith.constant 0 : i32
    %10 = arith.cmpi ne, %9, %c0_i32_7 : i32
    scf.if %10 {
      %c0_8 = arith.constant 0 : index
      %c0_9 = arith.constant 0 : index
      %11 = vector.load %arg3[%c0_8, %c0_9] : memref<16x16xf32, #tpu.memory_space<vmem>>, vector<16x16xf32>
      %cst_10 = arith.constant 2.44140625E-4 : f32
      %12 = vector.broadcast %cst_10 : f32 to vector<16x16xf32>
      %13 = arith.mulf %11, %12 : vector<16x16xf32>
      %c0_11 = arith.constant 0 : index
      %c0_12 = arith.constant 0 : index
      %14 = vector.load %arg2[%c0_11, %c0_12] : memref<16x16xf32, #tpu.memory_space<vmem>>, vector<16x16xf32>
      tpu.vector_store %arg2[%c0_11, %c0_12], %13 {strides = array<i32>} : memref<16x16xf32, #tpu.memory_space<vmem>>, vector<16x16xf32>,
    } else {
    }
    return
  }
  func.func @transform_0(%arg0: i32) -> (i32, i32) {
    %c0_i32 = arith.constant 0 : i32
    %c0_i32_0 = arith.constant 0 : i32
    return %c0_i32, %arg0 : i32, i32
  }
  func.func @transform_1(%arg0: i32) -> (i32, i32) {
    %c0_i32 = arith.constant 0 : i32
    %c0_i32_0 = arith.constant 0 : i32
    %c0_i32_1 = arith.constant 0 : i32
    return %c0_i32, %c0_i32_0 : i32, i32
  }
}

</mosaic_0001>

<bundles_post_ra>
// kernel: tpu_custom_call.1
= control target key start
LH: loop header
LB: loop body
LE: loop exit
PB: predicated region body
PF: predicated region fallthrough
CT: control target
= control target key end

     0   :  { %6 = vsyncpa [#allocation4], 0  ;;  %s209_s0 = inlined_call_operand.hbm [shape: f32[16,256], index: 0, kind: input, shape index: {}]   ;;  %s210_s1 = inlined_call_operand.hbm [shape: f32[16,16], index: 1, kind: output, shape index: {}]  }
   0x1   :  { %7 = vsyncpa [#allocation5], 0  ;;  %s12_s8 = sshll.u32 %s209_s0, 4  ;;  %s180_s9 = smov [#allocation3]   ;;  %s13_s8 = int_to_ptr.hbm [resolvable:$true] %s12_s8 }
   0x2   :  { %s14_s10 = sshll.u32 %s180_s9, 4  ;;  %s181_s11 = smov 256   ;;  %s15_s10 = int_to_ptr.vmem [resolvable:$true] %s14_s10 }
   0x3   :  { %s182_s12 = smov 16  }
   0x4   :  { %20 = dma.hbm_to_vmem [thread:$0]  %s13_s8, 512, %s15_s10, [#allocation4], %s181_s11, %s181_s11, %s182_s12  }
   0x5   :  { %176 = dma.done.wait [#allocation4], 512  }
   0x6   :  { %177 = vsyncadd [#allocation4], 4294966784  ;;  %v34_v0 = vld [vmem:[#allocation3 + $0x10] sm:$0xff]  ;;  %v35_v1 = vld [vmem:[#allocation3 + $0x18] sm:$0xff]  ;;  %vm29_vm0 = vcmask 130048   ;;  %v183_v4 = vmov 0.0  }
   0x7   :  { %117 = vmatpush.xpose.msra.mxu2 %v34_v0  ;;  %119 = vmatpush.xpose.msra.mxu3 %v35_v1  ;;  %v32_v2 = vld [vmem:[#allocation3] sm:$0xff]  ;;  %v33_v3 = vld [vmem:[#allocation3 + $0x8] sm:$0xff]  ;;  %30 = vst.msk [vmem:[#allocation2] sm:$0xff] %vm29_vm0, %v183_v4  ;;  %s184_s0 = smov [#allocation6]   ;;  %s104_s16 = sshll.u32 %s210_s1, 4  ;;  %s105_s16 = int_to_ptr.hbm [resolvable:$true] %s104_s16 }
   0x8   :  { %52 = vmatpush.xpose.msra.mxu0 %v34_v0  ;;  %75 = vmatpush.xpose.msra.mxu1 %v35_v1  ;;  %31 = vst.msk [vmem:[#allocation2 + $0x8] sm:$0xff] %vm29_vm0, %v183_v4  ;;  %s102_s13 = sshll.u32 %s184_s0, 4  ;;  %s185_s17 = smov 128   ;;  %s103_s13 = int_to_ptr.vmem [resolvable:$true] %s102_s13 }
   0x9   :  { %s186_s18 = smov 8  }
   0xb   :  { %118 = vmatpush.xpose.msra.mxu2 %v32_v2  ;;  %120 = vmatpush.xpose.msra.mxu3 %v33_v3 }
   0xc   :  { %53 = vmatpush.xpose.msra.mxu0 %v32_v2  ;;  %76 = vmatpush.xpose.msra.mxu1 %v33_v3 }
   0xe   :  { %57 = vmatmul.f32.vlgmr.msra.gmra.mxu2 %v34_v0  ;;  %80 = vmatmul.f32.vlgmr.msra.gmra.mxu3 %v35_v1  ;;  %v36_v6 = vld [vmem:[#allocation2] sm:$0xff] }
   0xf   :  { %54 = vmatmul.f32.vlgmr.msra.gmra.mxu0 %v32_v2  ;;  %77 = vmatmul.f32.vlgmr.msra.gmra.mxu1 %v33_v3  ;;  %v37_v11 = vld [vmem:[#allocation2 + $0x8] sm:$0xff] }
  0x8c   :  { %v55_v5 = vpop.f32.mrf.mxu0  ;;  %v78_v7 = vpop.f32.mrf.mxu1 }
  0x8d   :  { %v79_v8 = vadd.f32 %v78_v7, %v55_v5 }
  0x8f   :  { %v84_v9 = vadd.f32 %v79_v8, %v36_v6 }
  0x91   :  { %v58_v10 = vpop.f32.mrf.mxu2  ;;  %87 = vst.msk [vmem:[#allocation2] sm:$0xff] %vm29_vm0, %v84_v9  ;;  %v81_v12 = vpop.f32.mrf.mxu3 }
  0x92   :  { %v82_v13 = vadd.f32 %v81_v12, %v58_v10 }
  0x94   :  { %v85_v14 = vadd.f32 %v82_v13, %v37_v11 }
  0x96   :  { %88 = vst.msk [vmem:[#allocation2 + $0x8] sm:$0xff] %vm29_vm0, %v85_v14 }
  0x98   :  { %v92_v15 = vld [vmem:[#allocation2] sm:$0xff] }
  0x99   :  { %v94_v16 = vmul.f32 0.00024414063, %v92_v15 }
  0x9b   :  { %96 = vst.msk [vmem:[#allocation6] sm:$0xff] %vm29_vm0, %v94_v16 }
  0x9d   :  { %v93_v17 = vld [vmem:[#allocation2 + $0x8] sm:$0xff] }
  0x9e   :  { %v95_v18 = vmul.f32 0.00024414063, %v93_v17 }
  0xa0   :  { %97 = vst.msk [vmem:[#allocation6 + $0x8] sm:$0xff] %vm29_vm0, %v95_v18 }
  0xa1   :  { %110 = dma.vmem_to_hbm [thread:$0]  %s103_s13, 256, %s105_s16, [#allocation5], %s185_s17, %s185_s17, %s186_s18  }
  0xa2   :  { %178 = dma.done.wait [#allocation5], 256  }
  0xa3   :  { %179 = vsyncadd [#allocation5], 4294967040 }
  0xa4   :  { %115 = vsyncpa [#allocation4], 1 }
  0xa5   :  { %116 = vsyncpa [#allocation5], 1 }

</bundles_post_ra>
